<compile_context>
chip_gen: v5e
topology: v5e:2x2
jax: 0.10.0
libtpu: 0.0.40
codegen_flags: <defaults>
</compile_context>

<pallas_src>
import math

import jax
import jax.numpy as jnp
from jax.experimental import pallas as pl
from jax.experimental.pallas import tpu as pltpu


def _round_up(x: int, m: int) -> int:
    return (x + m - 1) // m * m


def _matmul_kernel(x_ref, w_ref, o_ref, acc_ref):
    """Computes one (tm, tn) output tile; K (reduction) is the last grid axis."""

    @pl.when(pl.program_id(2) == 0)
    def _zero():
        acc_ref[...] = jnp.zeros_like(acc_ref)

    # MXU matmul with f32 accumulation; x tile (tm, tk), w tile (tk, tn).
    acc_ref[...] += jnp.dot(
        x_ref[...], w_ref[...], preferred_element_type=jnp.float32
    )

    @pl.when(pl.program_id(2) == pl.num_programs(2) - 1)
    def _store():
        o_ref[...] = acc_ref[...].astype(o_ref.dtype)


def row_parallel_linear(x, weight, *, tm=256, tn=256, tk=512):
    """y = x @ weight.T  (PyTorch F.linear, no bias, world_size == 1)."""
    orig_shape = x.shape
    k = orig_shape[-1]
    n, k_w = weight.shape
    assert k == k_w, f"in_features mismatch: x has {k}, weight has {k_w}"
    m = math.prod(orig_shape[:-1]) if len(orig_shape) > 1 else 1
    out_dtype = x.dtype

    x2 = x.reshape(m, k)
    # Pre-transpose the weight once in the wrapper (paid one time in HBM) so
    # the RHS tile is (tk, tn) with N on lanes -> lane-dense MXU feed + output.
    w_t = weight.T  # (K, N)

    # Clamp tiles to the (padded) problem size; lane dims stay multiples of
    # 128, sublane (M) dim a multiple of 16 for bf16 packing. This also covers
    # the decode / small-M case (tm collapses to round_up(M, 16)).
    tm = min(tm, _round_up(m, 16))
    tn = min(tn, _round_up(n, 128))
    tk = min(tk, _round_up(k, 128))

    mp = _round_up(m, tm)
    np_ = _round_up(n, tn)
    kp = _round_up(k, tk)

    if (mp, kp) != (m, k):
        x2 = jnp.pad(x2, ((0, mp - m), (0, kp - k)))
    if (kp, np_) != (k, n):
        w_t = jnp.pad(w_t, ((0, kp - k), (0, np_ - n)))

    grid = (mp // tm, np_ // tn, kp // tk)

    # Double-buffered inputs/outputs + f32 accumulator; leave headroom but cap
    # below v7x's 64 MiB physical VMEM.
    elt = jnp.dtype(out_dtype).itemsize
    vmem_bytes = (
        2 * tm * tk * x2.dtype.itemsize      # x, double-buffered
        + 2 * tk * tn * w_t.dtype.itemsize   # w, double-buffered
        + 2 * tm * tn * elt                  # out, double-buffered
        + tm * tn * 4                        # f32 accumulator scratch
    )
    vmem_limit = int(min(max(2 * vmem_bytes, 32 * 1024 * 1024), 48 * 1024 * 1024))

    cost = pl.CostEstimate(
        flops=2 * m * n * k,
        bytes_accessed=(m * k + k * n) * x2.dtype.itemsize + m * n * elt,
        transcendentals=0,
    )

    out = pl.pallas_call(
        _matmul_kernel,
        out_shape=jax.ShapeDtypeStruct((mp, np_), out_dtype),
        grid_spec=pltpu.PrefetchScalarGridSpec(
            num_scalar_prefetch=0,
            grid=grid,
            in_specs=[
                pl.BlockSpec((tm, tk), lambda i, j, kk: (i, kk)),
                pl.BlockSpec((tk, tn), lambda i, j, kk: (kk, j)),
            ],
            out_specs=pl.BlockSpec((tm, tn), lambda i, j, kk: (i, j)),
            scratch_shapes=[pltpu.VMEM((tm, tn), jnp.float32)],
        ),
        compiler_params=pltpu.CompilerParams(
            dimension_semantics=("parallel", "parallel", "arbitrary"),
            vmem_limit_bytes=vmem_limit,
        ),
        cost_estimate=cost,
    )(x2, w_t)

    # Strip padding; world_size == 1 -> no all_reduce; bias is None.
    y = out[:m, :n]
    return y.reshape(*orig_shape[:-1], n)


def _reference(x, weight):
    m = x.shape[:-1]
    y = jnp.dot(
        x.astype(jnp.float32).reshape(-1, x.shape[-1]),
        weight.astype(jnp.float32).T,
    )
    return y.reshape(*m, weight.shape[0]).astype(x.dtype)


if __name__ == "__main__":
    key = jax.random.PRNGKey(0)
    kx1, kw1, kx2, kw2 = jax.random.split(key, 4)

    # Test 1: small ragged shapes (exercise padding of M / N / K).
    batch, seq, in_features, out_features = 2, 8, 32, 48
    x1 = jax.random.normal(kx1, (batch, seq, in_features), dtype=jnp.bfloat16)
    w1 = (0.05 * jax.random.normal(kw1, (out_features, in_features),
                                   dtype=jnp.float32)).astype(jnp.bfloat16)
    y1 = jax.block_until_ready(row_parallel_linear(x1, w1))
    ref1 = _reference(x1, w1)
    assert y1.shape == (batch, seq, out_features)
    err1 = float(jnp.max(jnp.abs(y1.astype(jnp.float32) - ref1.astype(jnp.float32))))
    assert err1 < 1e-1, f"test1 max abs err {err1}"

    # Test 2: multiple K steps (exercise the f32 accumulator across the grid).
    x2 = jax.random.normal(kx2, (2, 16, 256), dtype=jnp.bfloat16)
    w2 = (0.05 * jax.random.normal(kw2, (128, 256),
                                   dtype=jnp.float32)).astype(jnp.bfloat16)
    y2 = jax.block_until_ready(row_parallel_linear(x2, w2, tk=128))
    ref2 = _reference(x2, w2)
    assert y2.shape == (2, 16, 128)
    err2 = float(jnp.max(jnp.abs(y2.astype(jnp.float32) - ref2.astype(jnp.float32))))
    assert err2 < 2e-1, f"test2 max abs err {err2}"

    print("KERNEL_OK")
</pallas_src>

<mosaic_0001>
module attributes {stable_mosaic.version = 11 : i64} {
  func.func @_matmul_kernel(%arg0: i32, %arg1: i32, %arg2: i32, %arg3: memref<16x128xbf16, #tpu.memory_space<vmem>>, %arg4: memref<128x128xbf16, #tpu.memory_space<vmem>>, %arg5: memref<16x128xbf16, #tpu.memory_space<vmem>>, %arg6: memref<16x128xf32, #tpu.memory_space<vmem>>) attributes {dimension_semantics = [#tpu.dimension_semantics<parallel>, #tpu.dimension_semantics<parallel>, #tpu.dimension_semantics<arbitrary>], iteration_bounds = array<i64: 1, 1, 1>, scalar_prefetch = 0 : i64, scratch_operands = 1 : i64, tpu.core_type = #tpu.core_type<tc>, window_params = [{transform_indices = @transform_0, window_bounds = array<i64: 16, 128>}, {transform_indices = @transform_1, window_bounds = array<i64: 128, 128>}, {transform_indices = @transform_2, window_bounds = array<i64: 16, 128>}]} {
    %c0_i32 = arith.constant 0 : i32
    %0 = arith.cmpi eq, %arg2, %c0_i32 : i32
    %1 = arith.extui %0 : i1 to i32
    %c0_i32_0 = arith.constant 0 : i32
    %2 = arith.cmpi ne, %1, %c0_i32_0 : i32
    scf.if %2 {
      %cst_10 = arith.constant 0.000000e+00 : f32
      %12 = vector.broadcast %cst_10 : f32 to vector<16x128xf32>
      %c0_11 = arith.constant 0 : index
      %c0_12 = arith.constant 0 : index
      %13 = vector.load %arg6[%c0_11, %c0_12] : memref<16x128xf32, #tpu.memory_space<vmem>>, vector<16x128xf32>
      tpu.vector_store %arg6[%c0_11, %c0_12], %12 {strides = array<i32>} : memref<16x128xf32, #tpu.memory_space<vmem>>, vector<16x128xf32>,
    } else {
    }
    %c0 = arith.constant 0 : index
    %c0_1 = arith.constant 0 : index
    %3 = vector.load %arg6[%c0, %c0_1] : memref<16x128xf32, #tpu.memory_space<vmem>>, vector<16x128xf32>
    %c0_2 = arith.constant 0 : index
    %c0_3 = arith.constant 0 : index
    %4 = vector.load %arg3[%c0_2, %c0_3] : memref<16x128xbf16, #tpu.memory_space<vmem>>, vector<16x128xbf16>
    %c0_4 = arith.constant 0 : index
    %c0_5 = arith.constant 0 : index
    %5 = vector.load %arg4[%c0_4, %c0_5] : memref<128x128xbf16, #tpu.memory_space<vmem>>, vector<128x128xbf16>
    %cst = arith.constant dense<0.000000e+00> : vector<16x128xf32>
    %6 = tpu.matmul %4, %5, %cst {dimension_numbers = #tpu.dot_dimension_numbers<[1], [0], [0], [1], [0, 0, 1, 1], [], []>} : vector<16x128xbf16>, vector<128x128xbf16>, vector<16x128xf32> -> vector<16x128xf32>
    %7 = arith.addf %3, %6 : vector<16x128xf32>
    %c0_6 = arith.constant 0 : index
    %c0_7 = arith.constant 0 : index
    %8 = vector.load %arg6[%c0_6, %c0_7] : memref<16x128xf32, #tpu.memory_space<vmem>>, vector<16x128xf32>
    tpu.vector_store %arg6[%c0_6, %c0_7], %7 {strides = array<i32>} : memref<16x128xf32, #tpu.memory_space<vmem>>, vector<16x128xf32>,
    %c0_i32_8 = arith.constant 0 : i32
    %9 = arith.cmpi eq, %arg2, %c0_i32_8 : i32
    %10 = arith.extui %9 : i1 to i32
    %c0_i32_9 = arith.constant 0 : i32
    %11 = arith.cmpi ne, %10, %c0_i32_9 : i32
    scf.if %11 {
      %c0_10 = arith.constant 0 : index
      %c0_11 = arith.constant 0 : index
      %12 = vector.load %arg6[%c0_10, %c0_11] : memref<16x128xf32, #tpu.memory_space<vmem>>, vector<16x128xf32>
      %13 = arith.truncf %12 : vector<16x128xf32> to vector<16x128xbf16>
      %c0_12 = arith.constant 0 : index
      %c0_13 = arith.constant 0 : index
      %14 = vector.load %arg5[%c0_12, %c0_13] : memref<16x128xbf16, #tpu.memory_space<vmem>>, vector<16x128xbf16>
      tpu.vector_store %arg5[%c0_12, %c0_13], %13 {strides = array<i32>} : memref<16x128xbf16, #tpu.memory_space<vmem>>, vector<16x128xbf16>,
    } else {
    }
    return
  }
  func.func @transform_0(%arg0: i32, %arg1: i32, %arg2: i32) -> (i32, i32) {
    %c0_i32 = arith.constant 0 : i32
    return %arg0, %arg2 : i32, i32
  }
  func.func @transform_1(%arg0: i32, %arg1: i32, %arg2: i32) -> (i32, i32) {
    %c0_i32 = arith.constant 0 : i32
    return %arg2, %arg1 : i32, i32
  }
  func.func @transform_2(%arg0: i32, %arg1: i32, %arg2: i32) -> (i32, i32) {
    %c0_i32 = arith.constant 0 : i32
    return %arg0, %arg1 : i32, i32
  }
}

</mosaic_0001>

<bundles_post_ra>
// kernel: tpu_custom_call.1
= control target key start
LH: loop header
LB: loop body
LE: loop exit
PB: predicated region body
PF: predicated region fallthrough
CT: control target
= control target key end

     0   :  { %7 = vsyncpa [#allocation4], 0  ;;  %s342_s0 = inlined_call_operand.hbm [shape: bf16[16,128], index: 0, kind: input, shape index: {}]   ;;  %s343_s1 = inlined_call_operand.hbm [shape: bf16[128,128], index: 1, kind: input, shape index: {}]   ;;  %s344_s2 = inlined_call_operand.hbm [shape: bf16[16,128], index: 2, kind: output, shape index: {}]  }
   0x1   :  { %8 = vsyncpa [#allocation7], 0 }
   0x2   :  { %9 = vsyncpa [#allocation5], 0  ;;  %s14_s11 = sshll.u32 %s342_s0, 4  ;;  %s304_s12 = smov [#allocation3]   ;;  %s15_s11 = int_to_ptr.hbm [resolvable:$true] %s14_s11 }
   0x3   :  { %s16_s13 = sshll.u32 %s304_s12, 4  ;;  %s27_s16 = sshll.u32 %s343_s1, 4  ;;  %s17_s13 = int_to_ptr.vmem [resolvable:$true] %s16_s13  ;;  %s28_s16 = int_to_ptr.hbm [resolvable:$true] %s27_s16 }
   0x4   :  { %s305_s17 = smov 64   ;;  %s306_s18 = smov 4  }
   0x5   :  { %22 = dma.hbm_to_vmem [thread:$0]  %s15_s11, 128, %s17_s13, [#allocation4], %s305_s17, %s305_s17, %s306_s18  }
   0x6   :  { %s307_s19 = smov [#allocation6]  }
   0x7   :  { %s29_s20 = sshll.u32 %s307_s19, 4  ;;  %s30_s20 = int_to_ptr.vmem [resolvable:$true] %s29_s20 }
   0x8   :  { %35 = dma.hbm_to_vmem [thread:$0]  %s28_s16, 1024, %s30_s20, [#allocation7], %s305_s17, %s305_s17, %s306_s18  }
   0x9   :  { %298 = dma.done.wait [#allocation4], 128  }
   0xa   :  { %299 = vsyncadd [#allocation4], 4294967168 }
   0xb   :  { %300 = dma.done.wait [#allocation7], 1024  }
   0xc   :  { %301 = vsyncadd [#allocation7], 4294966272  ;;  %v215_v0 = vld [vmem:[#allocation6 + $0x38] sm:$0xff]  ;;  %v214_v1 = vld [vmem:[#allocation6 + $0x30] sm:$0xff]  ;;  %s308_s0 = smov [#allocation8]   ;;  %s157_s23 = sshll.u32 %s344_s2, 4  ;;  %s158_s23 = int_to_ptr.hbm [resolvable:$true] %s157_s23 }
   0xd   :  { %124 = vmatpush.bf16.msra.mxu0 %v215_v0  ;;  %v213_v2 = vld [vmem:[#allocation6 + $0x28] sm:$0xff]  ;;  %v212_v3 = vld [vmem:[#allocation6 + $0x20] sm:$0xff]  ;;  %v211_v4 = vld [vmem:[#allocation6 + $0x18] sm:$0xff]  ;;  %s155_s1 = sshll.u32 %s308_s0, 4  ;;  %s156_s1 = int_to_ptr.vmem [resolvable:$true] %s155_s1 }
   0xe   :  { %v210_v5 = vld [vmem:[#allocation6 + $0x10] sm:$0xff]  ;;  %v209_v6 = vld [vmem:[#allocation6 + $0x8] sm:$0xff]  ;;  %v208_v7 = vld [vmem:[#allocation6] sm:$0xff] }
   0xf   :  { %v207_v8 = vld [vmem:[#allocation3] sm:$0xff] }
  0x11   :  { %125 = vmatpush.bf16.msra.mxu0 %v214_v1 }
  0x15   :  { %126 = vmatpush.bf16.msra.mxu0 %v213_v2 }
  0x19   :  { %127 = vmatpush.bf16.msra.mxu0 %v212_v3 }
  0x1d   :  { %128 = vmatpush.bf16.msra.mxu0 %v211_v4 }
  0x21   :  { %129 = vmatpush.bf16.msra.mxu0 %v210_v5 }
  0x25   :  { %130 = vmatpush.bf16.msra.mxu0 %v209_v6 }
  0x29   :  { %131 = vmatpush.bf16.msra.mxu0 %v208_v7 }
  0x2c   :  { %132 = vmatmul.bf16.vlgmr.msra.gmra.mxu0 %v207_v8 }
  0xa9   :  { %v133_v9 = vpop.f32.mrf.mxu0 }
  0xb1   :  { %v135_v10 = vpop.f32.mrf.mxu0 }
  0xb2   :  { %v219_v11 = vpack.c.bf16 %v135_v10, %v133_v9 }
  0xb4   :  { %220 = vst [vmem:[#allocation8] sm:$0xff] %v219_v11  }
  0xb5   :  { %163 = dma.vmem_to_hbm [thread:$0]  %s156_s1, 128, %s158_s23, [#allocation5], %s305_s17, %s305_s17, %s306_s18  }
  0xb6   :  { %302 = dma.done.wait [#allocation5], 128  }
  0xb7   :  { %303 = vsyncadd [#allocation5], 4294967168 }
  0xb8   :  { %168 = vsyncpa [#allocation4], 1 }
  0xb9   :  { %169 = vsyncpa [#allocation7], 1 }
  0xba   :  { %170 = vsyncpa [#allocation5], 1 }

</bundles_post_ra>
